<compile_context>
chip_gen: v5e
topology: v5e:2x2
jax: 0.10.0
libtpu: 0.0.40
codegen_flags: <defaults>
</compile_context>

<pallas_src>
import functools

import jax
import jax.numpy as jnp
from jax.experimental import pallas as pl
from jax.experimental.pallas import tpu as pltpu


# ---------------------------------------------------------------------------
# Weight preparation (wrapper-side, plain JAX)
# ---------------------------------------------------------------------------
def _make_banded_weights(w_hwio, W):
    """Fold the kw (width) taps + width reflect-padding into a deep banded weight.

    w_hwio: (3, 3, Cin, Cout)  ->  B: (3*W*Cin, W*Cout)

      B[kh*W*Cin + u*Cin + ci, w*Cout + co]
          = sum_{kw : reflect(w + kw - 1) == u} w_hwio[kh, kw, ci, co]

    so that, with A_cat = [x[h-1] | x[h] | x[h+1]] (width-flattened rows,
    H reflect already applied),  out[h] = A_cat[h] @ B  is exactly the 3x3
    reflect-padded (pad=1) convolution.
    """
    KH, KW, Ci, Co = w_hwio.shape
    w_idx = jnp.arange(W)                                  # output columns
    k_idx = jnp.arange(KW)                                 # 0, 1, 2
    src = w_idx[None, :] + k_idx[:, None] - 1              # (KW, W), in [-1, W]
    src = jnp.where(src < 0, -src, src)                    # reflect left edge
    src = jnp.where(src > W - 1, 2 * (W - 1) - src, src)   # reflect right edge
    u = jnp.arange(W)
    sel = (src[:, None, :] == u[None, :, None]).astype(w_hwio.dtype)  # (KW, W, W)
    b = jnp.einsum("kuw,hkio->huiwo", sel, w_hwio)         # (KH, W, Ci, W, Co)
    return b.reshape(KH * W * Ci, W * Co)                  # stack kh taps along K


# ---------------------------------------------------------------------------
# Kernel
# ---------------------------------------------------------------------------
def _conv_bn_lrelu_stage(x_f32, b_ref, scale, bias, *, H):
    """One Conv(3x3, reflect) + folded-BN + LeakyReLU stage, lane-dense & in-register.

    x_f32 : (M, W*C)  f32 activation rows (M = N*H, width&channel flattened)
    b_ref : (3*W*C, W*Cout) bf16 banded weights (kw reflect folded in, kh stacked on K)
    scale : (1, W*Cout) f32 folded BN scale, tiled over W
    bias  : (1, W*Cout) f32 folded BN bias,  tiled over W
    """
    M = x_f32.shape[0]
    xb = x_f32.astype(jnp.bfloat16)                        # single cast per stage

    # Row-shifted copies (built in vregs, no VMEM scratch round-trip).
    #   x_up[i] = x[i-1]  (row 0 is a dummy, fixed below)
    #   x_dn[i] = x[i+1]  (row M-1 is a dummy, fixed below)
    x_up = jnp.concatenate([xb[:1], xb[:-1]], axis=0)
    x_dn = jnp.concatenate([xb[1:], xb[-1:]], axis=0)

    # Per-image reflect boundary fixups (also prevents bleed between images).
    row = jax.lax.broadcasted_iota(jnp.int32, xb.shape, 0)
    is_first = (row % H) == 0                              # first row of each image
    is_last = (row % H) == (H - 1)                         # last row of each image
    a_top = jnp.where(is_first, x_dn, x_up)                # row -1 reflects to row 1
    a_bot = jnp.where(is_last, x_up, x_dn)                 # row H  reflects to row H-2

    # Fuse the 3 kh taps into one deep matmul: (M, 3*W*C) @ (3*W*C, W*Cout).
    a_cat = jnp.concatenate([a_top, xb, a_bot], axis=1)
    acc = jnp.dot(a_cat, b_ref[...], preferred_element_type=jnp.float32)

    y = acc * scale + bias                                 # folded BatchNorm (eval)
    return jnp.where(y >= 0, y, 0.01 * y)                  # LeakyReLU(0.01); Dropout2d(eval)=id


def fused_conv_block_kernel(x_ref, b1_ref, s1_ref, t1_ref,
                            b2_ref, s2_ref, t2_ref, o_ref, *, H):
    """Both Conv+BN+LeakyReLU stages for the whole batch, fully in VMEM/vregs.

    x_ref : (N*H, W*Cin)   o_ref : (N*H, W*Cout)   (lane-dense layouts)
    """
    y1 = _conv_bn_lrelu_stage(x_ref[...], b1_ref, s1_ref[...], t1_ref[...], H=H)
    y2 = _conv_bn_lrelu_stage(y1, b2_ref, s2_ref[...], t2_ref[...], H=H)
    o_ref[...] = y2.astype(o_ref.dtype)


# ---------------------------------------------------------------------------
# Wrapper
# ---------------------------------------------------------------------------
def conv_block_forward_nhwc(x_nhwc, w1, bn1, w2, bn2, eps=1e-5):
    """Fused Conv_Block forward.  x_nhwc: (N, H, W, Cin) -> (N, H, W, Cout)."""
    N, H, W, Cin = x_nhwc.shape
    Cout = w1.shape[-1]
    assert H >= 2 and W >= 2, "reflect pad=1 requires H, W >= 2"

    def fold_bn(bn):
        scale = bn["gamma"] / jnp.sqrt(bn["var"] + eps)
        bias = bn["beta"] - bn["mean"] * scale
        # Tile per-channel params over W so they align with the (.., W*Cout) layout.
        return (jnp.tile(scale, W).reshape(1, W * Cout).astype(jnp.float32),
                jnp.tile(bias, W).reshape(1, W * Cout).astype(jnp.float32))

    s1, t1 = fold_bn(bn1)
    s2, t2 = fold_bn(bn2)
    b1 = _make_banded_weights(w1, W).astype(jnp.bfloat16)   # (3*W*Cin,  W*Cout)
    b2 = _make_banded_weights(w2, W).astype(jnp.bfloat16)   # (3*W*Cout, W*Cout)

    M = N * H
    x_flat = x_nhwc.reshape(M, W * Cin)                      # lane-dense input layout

    kernel = functools.partial(fused_conv_block_kernel, H=H)
    out_flat = pl.pallas_call(
        kernel,
        out_shape=jax.ShapeDtypeStruct((M, W * Cout), x_nhwc.dtype),
        grid=(1,),                                           # single step: whole batch
        in_specs=[
            pl.BlockSpec((M, W * Cin), lambda i: (0, 0)),
            pl.BlockSpec((3 * W * Cin, W * Cout), lambda i: (0, 0)),
            pl.BlockSpec((1, W * Cout), lambda i: (0, 0)),
            pl.BlockSpec((1, W * Cout), lambda i: (0, 0)),
            pl.BlockSpec((3 * W * Cout, W * Cout), lambda i: (0, 0)),
            pl.BlockSpec((1, W * Cout), lambda i: (0, 0)),
            pl.BlockSpec((1, W * Cout), lambda i: (0, 0)),
        ],
        out_specs=pl.BlockSpec((M, W * Cout), lambda i: (0, 0)),
    )(x_flat, b1, s1, t1, b2, s2, t2)

    return out_flat.reshape(N, H, W, Cout)


@jax.jit
def conv_block_forward(x_nchw, w1, bn1, w2, bn2):
    """Conv_Block.forward.  x_nchw: (N, Cin, H, W) -> (N, Cout, H, W).

    NCHW wrapper only for PyTorch interface parity; the transposes are HBM
    passes — call conv_block_forward_nhwc directly to keep NHWC end-to-end.
    """
    x = jnp.transpose(x_nchw, (0, 2, 3, 1))                  # NCHW -> NHWC
    y = conv_block_forward_nhwc(x, w1, bn1, w2, bn2)
    return jnp.transpose(y, (0, 3, 1, 2))                    # NHWC -> NCHW


# ---------------------------------------------------------------------------
# Parameters & reference
# ---------------------------------------------------------------------------
def init_conv_block_params(key, in_channel, out_channel):
    """Deterministic synthetic parameters (conv weights in HWIO layout)."""
    k1, k2, k3, k4, k5, k6 = jax.random.split(key, 6)
    std1 = (1.0 / (in_channel * 9)) ** 0.5
    std2 = (1.0 / (out_channel * 9)) ** 0.5
    w1 = jax.random.normal(k1, (3, 3, in_channel, out_channel), jnp.float32) * std1
    w2 = jax.random.normal(k2, (3, 3, out_channel, out_channel), jnp.float32) * std2
    bn1 = dict(
        gamma=1.0 + 0.1 * jax.random.normal(k3, (out_channel,), jnp.float32),
        beta=0.1 * jax.random.normal(k4, (out_channel,), jnp.float32),
        mean=0.05 * jax.random.normal(k5, (out_channel,), jnp.float32),
        var=0.5 + jnp.abs(jax.random.normal(k6, (out_channel,), jnp.float32)),
    )
    bn2 = dict(
        gamma=jnp.ones((out_channel,), jnp.float32),
        beta=jnp.zeros((out_channel,), jnp.float32),
        mean=jnp.zeros((out_channel,), jnp.float32),
        var=jnp.ones((out_channel,), jnp.float32),
    )
    return w1, bn1, w2, bn2


def _reference_forward(x_nchw, w1, bn1, w2, bn2, eps=1e-5, mxu_dtype=jnp.float32):
    """Pure-JAX reference (XLA conv).  mxu_dtype=bf16 mirrors the kernel's MXU precision."""
    def block(x, w, bn):
        xp = jnp.pad(x, ((0, 0), (1, 1), (1, 1), (0, 0)), mode="reflect")
        y = jax.lax.conv_general_dilated(
            xp.astype(mxu_dtype), w.astype(mxu_dtype),
            window_strides=(1, 1), padding="VALID",
            dimension_numbers=("NHWC", "HWIO", "NHWC"),
            preferred_element_type=jnp.float32,
            precision=jax.lax.Precision.HIGHEST)
        scale = bn["gamma"] / jnp.sqrt(bn["var"] + eps)
        y = y * scale + (bn["beta"] - bn["mean"] * scale)
        return jnp.where(y >= 0, y, 0.01 * y)

    x = jnp.transpose(x_nchw, (0, 2, 3, 1))
    y = block(block(x, w1, bn1), w2, bn2)
    return jnp.transpose(y, (0, 3, 1, 2))


if __name__ == "__main__":
    N, Cin, Cout, H, W = 2, 4, 8, 16, 16

    key = jax.random.PRNGKey(0)
    kx, kp = jax.random.split(key)
    x = jax.random.normal(kx, (N, Cin, H, W), jnp.float32)   # NCHW like PyTorch
    w1, bn1, w2, bn2 = init_conv_block_params(kp, Cin, Cout)

    out = jax.block_until_ready(conv_block_forward(x, w1, bn1, w2, bn2))
    assert out.shape == (N, Cout, H, W), out.shape

    # Tight check vs. a reference that mirrors the kernel's bf16 MXU operands.
    ref_bf16 = _reference_forward(x, w1, bn1, w2, bn2, mxu_dtype=jnp.bfloat16)
    err_b = float(jnp.max(jnp.abs(out - ref_bf16)))
    assert jnp.allclose(out, ref_bf16, atol=3e-2, rtol=3e-2), err_b

    # Sanity check vs. full-f32 math (difference = deliberate bf16 MXU precision).
    ref_f32 = _reference_forward(x, w1, bn1, w2, bn2, mxu_dtype=jnp.float32)
    err_f = float(jnp.max(jnp.abs(out - ref_f32)))
    assert jnp.allclose(out, ref_f32, atol=6e-2, rtol=6e-2), err_f

    print("KERNEL_OK")
</pallas_src>

<mosaic_0001>
module attributes {stable_mosaic.version = 11 : i64} {
  func.func @fused_conv_block_kernel(%arg0: i32, %arg1: memref<32x64xf32, #tpu.memory_space<vmem>>, %arg2: memref<192x128xbf16, #tpu.memory_space<vmem>>, %arg3: memref<1x128xf32, #tpu.memory_space<vmem>>, %arg4: memref<1x128xf32, #tpu.memory_space<vmem>>, %arg5: memref<384x128xbf16, #tpu.memory_space<vmem>>, %arg6: memref<1x128xf32, #tpu.memory_space<vmem>>, %arg7: memref<1x128xf32, #tpu.memory_space<vmem>>, %arg8: memref<32x128xf32, #tpu.memory_space<vmem>>) attributes {dimension_semantics = [#tpu.dimension_semantics<arbitrary>], iteration_bounds = array<i64: 1>, scalar_prefetch = 0 : i64, scratch_operands = 0 : i64, tpu.core_type = #tpu.core_type<tc>, window_params = [{pipeline_mode = #tpu.pipeline_mode<synchronous>, transform_indices = @transform_0, window_bounds = array<i64: 32, 64>}, {pipeline_mode = #tpu.pipeline_mode<synchronous>, transform_indices = @transform_1, window_bounds = array<i64: 192, 128>}, {pipeline_mode = #tpu.pipeline_mode<synchronous>, transform_indices = @transform_2, window_bounds = array<i64: 1, 128>}, {pipeline_mode = #tpu.pipeline_mode<synchronous>, transform_indices = @transform_3, window_bounds = array<i64: 1, 128>}, {pipeline_mode = #tpu.pipeline_mode<synchronous>, transform_indices = @transform_4, window_bounds = array<i64: 384, 128>}, {pipeline_mode = #tpu.pipeline_mode<synchronous>, transform_indices = @transform_5, window_bounds = array<i64: 1, 128>}, {pipeline_mode = #tpu.pipeline_mode<synchronous>, transform_indices = @transform_6, window_bounds = array<i64: 1, 128>}, {pipeline_mode = #tpu.pipeline_mode<synchronous>, transform_indices = @transform_7, window_bounds = array<i64: 32, 128>}]} {
    %c0 = arith.constant 0 : index
    %c0_0 = arith.constant 0 : index
    %0 = vector.load %arg1[%c0, %c0_0] : memref<32x64xf32, #tpu.memory_space<vmem>>, vector<32x64xf32>
    %c0_1 = arith.constant 0 : index
    %c0_2 = arith.constant 0 : index
    %1 = vector.load %arg3[%c0_1, %c0_2] : memref<1x128xf32, #tpu.memory_space<vmem>>, vector<1x128xf32>
    %c0_3 = arith.constant 0 : index
    %c0_4 = arith.constant 0 : index
    %2 = vector.load %arg4[%c0_3, %c0_4] : memref<1x128xf32, #tpu.memory_space<vmem>>, vector<1x128xf32>
    %3 = arith.truncf %0 : vector<32x64xf32> to vector<32x64xbf16>
    %4 = vector.extract_strided_slice %3 {offsets = [0, 0], sizes = [1, 64], strides = [1, 1]} : vector<32x64xbf16> to vector<1x64xbf16>
    %5 = vector.extract_strided_slice %3 {offsets = [0, 0], sizes = [31, 64], strides = [1, 1]} : vector<32x64xbf16> to vector<31x64xbf16>
    %6 = tpu.concatenate %4, %5 in 0 : vector<1x64xbf16>, vector<31x64xbf16> -> vector<32x64xbf16>
    %7 = vector.extract_strided_slice %3 {offsets = [1, 0], sizes = [31, 64], strides = [1, 1]} : vector<32x64xbf16> to vector<31x64xbf16>
    %8 = vector.extract_strided_slice %3 {offsets = [31, 0], sizes = [1, 64], strides = [1, 1]} : vector<32x64xbf16> to vector<1x64xbf16>
    %9 = tpu.concatenate %7, %8 in 0 : vector<31x64xbf16>, vector<1x64xbf16> -> vector<32x64xbf16>
    %10 = tpu.iota {dimensions = array<i32: 0>} : vector<32x64xi32>
    %c16_i32 = arith.constant 16 : i32
    %c0_i32 = arith.constant 0 : i32
    %11 = arith.cmpi eq, %c16_i32, %c0_i32 : i32
    %c1_i32 = arith.constant 1 : i32
    %12 = arith.select %11, %c1_i32, %c16_i32 : i32
    %13 = vector.broadcast %12 : i32 to vector<32x64xi32>
    %14 = arith.remsi %10, %13 : vector<32x64xi32>
    %c0_i32_5 = arith.constant 0 : i32
    %15 = vector.broadcast %c0_i32_5 : i32 to vector<32x64xi32>
    %16 = arith.cmpi ne, %14, %15 : vector<32x64xi32>
    %c0_i32_6 = arith.constant 0 : i32
    %17 = vector.broadcast %c0_i32_6 : i32 to vector<32x64xi32>
    %18 = arith.cmpi slt, %14, %17 : vector<32x64xi32>
    %c0_i32_7 = arith.constant 0 : i32
    %19 = arith.cmpi slt, %12, %c0_i32_7 : i32
    %20 = vector.broadcast %19 : i1 to vector<32x64xi1>
    %21 = vector.broadcast %20 : vector<32x64xi1> to vector<32x64xi1>
    %22 = arith.xori %18, %21 : vector<32x64xi1>
    %23 = arith.andi %22, %16 : vector<32x64xi1>
    %24 = vector.broadcast %12 : i32 to vector<32x64xi32>
    %25 = arith.addi %14, %24 : vector<32x64xi32>
    %26 = arith.select %23, %25, %14 : vector<32x64xi1>, vector<32x64xi32>
    %c0_i32_8 = arith.constant 0 : i32
    %27 = vector.broadcast %c0_i32_8 : i32 to vector<32x64xi32>
    %28 = arith.cmpi eq, %26, %27 : vector<32x64xi32>
    %c16_i32_9 = arith.constant 16 : i32
    %c0_i32_10 = arith.constant 0 : i32
    %29 = arith.cmpi eq, %c16_i32_9, %c0_i32_10 : i32
    %c1_i32_11 = arith.constant 1 : i32
    %30 = arith.select %29, %c1_i32_11, %c16_i32_9 : i32
    %31 = vector.broadcast %30 : i32 to vector<32x64xi32>
    %32 = arith.remsi %10, %31 : vector<32x64xi32>
    %c0_i32_12 = arith.constant 0 : i32
    %33 = vector.broadcast %c0_i32_12 : i32 to vector<32x64xi32>
    %34 = arith.cmpi ne, %32, %33 : vector<32x64xi32>
    %c0_i32_13 = arith.constant 0 : i32
    %35 = vector.broadcast %c0_i32_13 : i32 to vector<32x64xi32>
    %36 = arith.cmpi slt, %32, %35 : vector<32x64xi32>
    %c0_i32_14 = arith.constant 0 : i32
    %37 = arith.cmpi slt, %30, %c0_i32_14 : i32
    %38 = vector.broadcast %37 : i1 to vector<32x64xi1>
    %39 = vector.broadcast %38 : vector<32x64xi1> to vector<32x64xi1>
    %40 = arith.xori %36, %39 : vector<32x64xi1>
    %41 = arith.andi %40, %34 : vector<32x64xi1>
    %42 = vector.broadcast %30 : i32 to vector<32x64xi32>
    %43 = arith.addi %32, %42 : vector<32x64xi32>
    %44 = arith.select %41, %43, %32 : vector<32x64xi1>, vector<32x64xi32>
    %c15_i32 = arith.constant 15 : i32
    %45 = vector.broadcast %c15_i32 : i32 to vector<32x64xi32>
    %46 = arith.cmpi eq, %44, %45 : vector<32x64xi32>
    %47 = arith.select %28, %9, %6 : vector<32x64xi1>, vector<32x64xbf16>
    %48 = arith.select %46, %6, %9 : vector<32x64xi1>, vector<32x64xbf16>
    %49 = tpu.concatenate %47, %3, %48 in 1 : vector<32x64xbf16>, vector<32x64xbf16>, vector<32x64xbf16> -> vector<32x192xbf16>
    %c0_15 = arith.constant 0 : index
    %c0_16 = arith.constant 0 : index
    %50 = vector.load %arg2[%c0_15, %c0_16] : memref<192x128xbf16, #tpu.memory_space<vmem>>, vector<192x128xbf16>
    %cst = arith.constant dense<0.000000e+00> : vector<32x128xf32>
    %51 = tpu.matmul %49, %50, %cst {dimension_numbers = #tpu.dot_dimension_numbers<[1], [0], [0], [1], [0, 0, 1, 1], [], []>} : vector<32x192xbf16>, vector<192x128xbf16>, vector<32x128xf32> -> vector<32x128xf32>
    %52 = vector.broadcast %1 : vector<1x128xf32> to vector<32x128xf32>
    %53 = arith.mulf %51, %52 : vector<32x128xf32>
    %54 = vector.broadcast %2 : vector<1x128xf32> to vector<32x128xf32>
    %55 = arith.addf %53, %54 : vector<32x128xf32>
    %cst_17 = arith.constant 0.000000e+00 : f32
    %56 = vector.broadcast %cst_17 : f32 to vector<32x128xf32>
    %57 = arith.cmpf oge, %55, %56 : vector<32x128xf32>
    %cst_18 = arith.constant 0.00999999977 : f32
    %58 = vector.broadcast %cst_18 : f32 to vector<32x128xf32>
    %59 = arith.mulf %58, %55 : vector<32x128xf32>
    %60 = arith.select %57, %55, %59 : vector<32x128xi1>, vector<32x128xf32>
    %c0_19 = arith.constant 0 : index
    %c0_20 = arith.constant 0 : index
    %61 = vector.load %arg6[%c0_19, %c0_20] : memref<1x128xf32, #tpu.memory_space<vmem>>, vector<1x128xf32>
    %c0_21 = arith.constant 0 : index
    %c0_22 = arith.constant 0 : index
    %62 = vector.load %arg7[%c0_21, %c0_22] : memref<1x128xf32, #tpu.memory_space<vmem>>, vector<1x128xf32>
    %63 = arith.truncf %60 : vector<32x128xf32> to vector<32x128xbf16>
    %64 = vector.extract_strided_slice %63 {offsets = [0, 0], sizes = [1, 128], strides = [1, 1]} : vector<32x128xbf16> to vector<1x128xbf16>
    %65 = vector.extract_strided_slice %63 {offsets = [0, 0], sizes = [31, 128], strides = [1, 1]} : vector<32x128xbf16> to vector<31x128xbf16>
    %66 = tpu.concatenate %64, %65 in 0 : vector<1x128xbf16>, vector<31x128xbf16> -> vector<32x128xbf16>
    %67 = vector.extract_strided_slice %63 {offsets = [1, 0], sizes = [31, 128], strides = [1, 1]} : vector<32x128xbf16> to vector<31x128xbf16>
    %68 = vector.extract_strided_slice %63 {offsets = [31, 0], sizes = [1, 128], strides = [1, 1]} : vector<32x128xbf16> to vector<1x128xbf16>
    %69 = tpu.concatenate %67, %68 in 0 : vector<31x128xbf16>, vector<1x128xbf16> -> vector<32x128xbf16>
    %70 = tpu.iota {dimensions = array<i32: 0>} : vector<32x128xi32>
    %c16_i32_23 = arith.constant 16 : i32
    %c0_i32_24 = arith.constant 0 : i32
    %71 = arith.cmpi eq, %c16_i32_23, %c0_i32_24 : i32
    %c1_i32_25 = arith.constant 1 : i32
    %72 = arith.select %71, %c1_i32_25, %c16_i32_23 : i32
    %73 = vector.broadcast %72 : i32 to vector<32x128xi32>
    %74 = arith.remsi %70, %73 : vector<32x128xi32>
    %c0_i32_26 = arith.constant 0 : i32
    %75 = vector.broadcast %c0_i32_26 : i32 to vector<32x128xi32>
    %76 = arith.cmpi ne, %74, %75 : vector<32x128xi32>
    %c0_i32_27 = arith.constant 0 : i32
    %77 = vector.broadcast %c0_i32_27 : i32 to vector<32x128xi32>
    %78 = arith.cmpi slt, %74, %77 : vector<32x128xi32>
    %c0_i32_28 = arith.constant 0 : i32
    %79 = arith.cmpi slt, %72, %c0_i32_28 : i32
    %80 = vector.broadcast %79 : i1 to vector<32x128xi1>
    %81 = vector.broadcast %80 : vector<32x128xi1> to vector<32x128xi1>
    %82 = arith.xori %78, %81 : vector<32x128xi1>
    %83 = arith.andi %82, %76 : vector<32x128xi1>
    %84 = vector.broadcast %72 : i32 to vector<32x128xi32>
    %85 = arith.addi %74, %84 : vector<32x128xi32>
    %86 = arith.select %83, %85, %74 : vector<32x128xi1>, vector<32x128xi32>
    %c0_i32_29 = arith.constant 0 : i32
    %87 = vector.broadcast %c0_i32_29 : i32 to vector<32x128xi32>
    %88 = arith.cmpi eq, %86, %87 : vector<32x128xi32>
    %c16_i32_30 = arith.constant 16 : i32
    %c0_i32_31 = arith.constant 0 : i32
    %89 = arith.cmpi eq, %c16_i32_30, %c0_i32_31 : i32
    %c1_i32_32 = arith.constant 1 : i32
    %90 = arith.select %89, %c1_i32_32, %c16_i32_30 : i32
    %91 = vector.broadcast %90 : i32 to vector<32x128xi32>
    %92 = arith.remsi %70, %91 : vector<32x128xi32>
    %c0_i32_33 = arith.constant 0 : i32
    %93 = vector.broadcast %c0_i32_33 : i32 to vector<32x128xi32>
    %94 = arith.cmpi ne, %92, %93 : vector<32x128xi32>
    %c0_i32_34 = arith.constant 0 : i32
    %95 = vector.broadcast %c0_i32_34 : i32 to vector<32x128xi32>
    %96 = arith.cmpi slt, %92, %95 : vector<32x128xi32>
    %c0_i32_35 = arith.constant 0 : i32
    %97 = arith.cmpi slt, %90, %c0_i32_35 : i32
    %98 = vector.broadcast %97 : i1 to vector<32x128xi1>
    %99 = vector.broadcast %98 : vector<32x128xi1> to vector<32x128xi1>
    %100 = arith.xori %96, %99 : vector<32x128xi1>
    %101 = arith.andi %100, %94 : vector<32x128xi1>
    %102 = vector.broadcast %90 : i32 to vector<32x128xi32>
    %103 = arith.addi %92, %102 : vector<32x128xi32>
    %104 = arith.select %101, %103, %92 : vector<32x128xi1>, vector<32x128xi32>
    %c15_i32_36 = arith.constant 15 : i32
    %105 = vector.broadcast %c15_i32_36 : i32 to vector<32x128xi32>
    %106 = arith.cmpi eq, %104, %105 : vector<32x128xi32>
    %107 = arith.select %88, %69, %66 : vector<32x128xi1>, vector<32x128xbf16>
    %108 = arith.select %106, %66, %69 : vector<32x128xi1>, vector<32x128xbf16>
    %109 = tpu.concatenate %107, %63, %108 in 1 : vector<32x128xbf16>, vector<32x128xbf16>, vector<32x128xbf16> -> vector<32x384xbf16>
    %c0_37 = arith.constant 0 : index
    %c0_38 = arith.constant 0 : index
    %110 = vector.load %arg5[%c0_37, %c0_38] : memref<384x128xbf16, #tpu.memory_space<vmem>>, vector<384x128xbf16>
    %cst_39 = arith.constant dense<0.000000e+00> : vector<32x128xf32>
    %111 = tpu.matmul %109, %110, %cst_39 {dimension_numbers = #tpu.dot_dimension_numbers<[1], [0], [0], [1], [0, 0, 1, 1], [], []>} : vector<32x384xbf16>, vector<384x128xbf16>, vector<32x128xf32> -> vector<32x128xf32>
    %112 = vector.broadcast %61 : vector<1x128xf32> to vector<32x128xf32>
    %113 = arith.mulf %111, %112 : vector<32x128xf32>
    %114 = vector.broadcast %62 : vector<1x128xf32> to vector<32x128xf32>
    %115 = arith.addf %113, %114 : vector<32x128xf32>
    %cst_40 = arith.constant 0.000000e+00 : f32
    %116 = vector.broadcast %cst_40 : f32 to vector<32x128xf32>
    %117 = arith.cmpf oge, %115, %116 : vector<32x128xf32>
    %cst_41 = arith.constant 0.00999999977 : f32
    %118 = vector.broadcast %cst_41 : f32 to vector<32x128xf32>
    %119 = arith.mulf %118, %115 : vector<32x128xf32>
    %120 = arith.select %117, %115, %119 : vector<32x128xi1>, vector<32x128xf32>
    %c0_42 = arith.constant 0 : index
    %c0_43 = arith.constant 0 : index
    %121 = vector.load %arg8[%c0_42, %c0_43] : memref<32x128xf32, #tpu.memory_space<vmem>>, vector<32x128xf32>
    tpu.vector_store %arg8[%c0_42, %c0_43], %120 {strides = array<i32>} : memref<32x128xf32, #tpu.memory_space<vmem>>, vector<32x128xf32>,
    return
  }
  func.func @transform_0(%arg0: i32) -> (i32, i32) {
    %c0_i32 = arith.constant 0 : i32
    %c0_i32_0 = arith.constant 0 : i32
    %c0_i32_1 = arith.constant 0 : i32
    return %c0_i32, %c0_i32_0 : i32, i32
  }
  func.func @transform_1(%arg0: i32) -> (i32, i32) {
    %c0_i32 = arith.constant 0 : i32
    %c0_i32_0 = arith.constant 0 : i32
    %c0_i32_1 = arith.constant 0 : i32
    return %c0_i32, %c0_i32_0 : i32, i32
  }
  func.func @transform_2(%arg0: i32) -> (i32, i32) {
    %c0_i32 = arith.constant 0 : i32
    %c0_i32_0 = arith.constant 0 : i32
    %c0_i32_1 = arith.constant 0 : i32
    return %c0_i32, %c0_i32_0 : i32, i32
  }
  func.func @transform_3(%arg0: i32) -> (i32, i32) {
    %c0_i32 = arith.constant 0 : i32
    %c0_i32_0 = arith.constant 0 : i32
    %c0_i32_1 = arith.constant 0 : i32
    return %c0_i32, %c0_i32_0 : i32, i32
  }
  func.func @transform_4(%arg0: i32) -> (i32, i32) {
    %c0_i32 = arith.constant 0 : i32
    %c0_i32_0 = arith.constant 0 : i32
    %c0_i32_1 = arith.constant 0 : i32
    return %c0_i32, %c0_i32_0 : i32, i32
  }
  func.func @transform_5(%arg0: i32) -> (i32, i32) {
    %c0_i32 = arith.constant 0 : i32
    %c0_i32_0 = arith.constant 0 : i32
    %c0_i32_1 = arith.constant 0 : i32
    return %c0_i32, %c0_i32_0 : i32, i32
  }
  func.func @transform_6(%arg0: i32) -> (i32, i32) {
    %c0_i32 = arith.constant 0 : i32
    %c0_i32_0 = arith.constant 0 : i32
    %c0_i32_1 = arith.constant 0 : i32
    return %c0_i32, %c0_i32_0 : i32, i32
  }
  func.func @transform_7(%arg0: i32) -> (i32, i32) {
    %c0_i32 = arith.constant 0 : i32
    %c0_i32_0 = arith.constant 0 : i32
    %c0_i32_1 = arith.constant 0 : i32
    return %c0_i32, %c0_i32_0 : i32, i32
  }
}

</mosaic_0001>

<bundles_post_ra>
// kernel: tile.23
= control target key start
LH: loop header
LB: loop body
LE: loop exit
PB: predicated region body
PF: predicated region fallthrough
CT: control target
= control target key end

     0   :  { %s28_s0 = inlined_call_operand.vmem [shape: f32[8], index: 0, kind: input, shape index: {}]   ;;  %s29_s1 = inlined_call_operand.vmem [shape: f32[16,8], index: 1, kind: output, shape index: {}]  }
   0x1   :  { %v4_v0 = vld [vmem:[%s28_s0] ss:$0 sm:$0xff] }
   0x2   :  { %5 = vst [vmem:[%s29_s1] sm:$0xff] %v4_v0 }
   0x3   :  { %8 = vst [vmem:[%s29_s1 + $0x8] sm:$0xff] %v4_v0 }

// kernel: tile.24
= control target key start
LH: loop header
LB: loop body
LE: loop exit
PB: predicated region body
PF: predicated region fallthrough
CT: control target
= control target key end

     0   :  { %s131_s10 = smov 120   ;;  %s132_s11 = smov 104   ;;  %vm3_vm0 = vcmask 64512   ;;  %vm9_vm1 = vcmask 1048512   ;;  %vm15_vm2 = vcmask 982912   ;;  %vm21_vm3 = vcmask 917312   ;;  %s207_s0 = inlined_call_operand.vmem [shape: f32[16,8], index: 0, kind: input, shape index: {}]   ;;  %s208_s1 = inlined_call_operand.vmem [shape: f32[1,128], index: 1, kind: output, shape index: {}]  }
   0x1   :  { %v101_v0 = vld [vmem:[%s207_s0 + $0xf] sm:$0x1]   ;;  %v103_v1 = vld [vmem:[%s207_s0 + $0xd] sm:$0x1]   ;;  %v105_v2 = vld [vmem:[%s207_s0 + $0xb] sm:$0x1]  }
   0x2   :  { %7 = vrot.lane.b32.xlu0 %v101_v0, %s131_s10  ;;  %19 = vrot.lane.b32.xlu1 %v103_v1, %s132_s11  ;;  %s133_s14 = smov 88   ;;  %v102_v3 = vld [vmem:[%s207_s0 + $0xe] sm:$0x1]   ;;  %v104_v4 = vld [vmem:[%s207_s0 + $0xc] sm:$0x1]   ;;  %s134_s19 = smov 112  }
   0x3   :  { %31 = vrot.lane.b32.xlu2 %v105_v2, %s133_s14  ;;  %s135_s20 = smov 96   ;;  %v106_v5 = vld [vmem:[%s207_s0 + $0xa] sm:$0x1]   ;;  %s136_s23 = smov 80   ;;  %v107_v6 = vld [vmem:[%s207_s0 + $0x9] sm:$0x1]  }
   0x4   :  { %v108_v7 = vld [vmem:[%s207_s0 + $0x8] sm:$0x1]   ;;  %s137_s28 = smov 72   ;;  %s138_s29 = smov 64   ;;  %v109_v8 = vld [vmem:[%s207_s0 + $0x7] sm:$0x1]  }
   0x5   :  { %s139_s3 = smov 56   ;;  %v110_v9 = vld [vmem:[%s207_s0 + $0x6] sm:$0x1]   ;;  %v111_v10 = vld [vmem:[%s207_s0 + $0x5] sm:$0x1]   ;;  %s140_s8 = smov 48  }
   0x6   :  { %s141_s9 = smov 40   ;;  %v112_v11 = vld [vmem:[%s207_s0 + $0x4] sm:$0x1]   ;;  %s142_s12 = smov 32   ;;  %v113_v12 = vld [vmem:[%s207_s0 + $0x3] sm:$0x1]  }
   0x7   :  { %v114_v13 = vld [vmem:[%s207_s0 + $0x2] sm:$0x1]   ;;  %s143_s17 = smov 24   ;;  %s144_s18 = smov 16   ;;  %v115_v14 = vld [vmem:[%s207_s0 + $0x1] sm:$0x1]  }
   0x8   :  { %s145_s21 = smov 8   ;;  %v2_v15 = vld [vmem:[%s207_s0] sm:$0x1]   ;;  %vm27_vm4 = vcmask 851712   ;;  %vm33_vm5 = vcmask 786112   ;;  %vm39_vm6 = vcmask 720512  }
   0x9   :  { %4 = vst.msk [vmem:[#allocation0] sm:$0x1] %vm3_vm0, %v2_v15   ;;  %vm45_vm7 = vcmask 654912   ;;  %vm51_vm8 = vcmask 589312   ;;  %vm57_vm9 = vcmask 523712   ;;  %vm63_vm10 = vcmask 458112  }
   0xa   :  { %13 = vrot.lane.b32.xlu0 %v102_v3, %s134_s19  ;;  %25 = vrot.lane.b32.xlu1 %v104_v4, %s135_s20  ;;  %vm69_vm11 = vcmask 392512   ;;  %vm75_vm12 = vcmask 326912   ;;  %vm81_vm13 = vcmask 261312   ;;  %vm87_vm14 = vcmask 195712  }
   0xb   :  { %37 = vrot.lane.b32.xlu2 %v106_v5, %s136_s23  ;;  %vm93_vm15 = vcmask 130112  }
  0x12   :  { %43 = vrot.lane.b32.xlu0 %v107_v6, %s137_s28  ;;  %49 = vrot.lane.b32.xlu1 %v108_v7, %s138_s29 }
  0x13   :  { %55 = vrot.lane.b32.xlu2 %v109_v8, %s139_s3 }
  0x1a   :  { %61 = vrot.lane.b32.xlu0 %v110_v9, %s140_s8  ;;  %67 = vrot.lane.b32.xlu1 %v111_v10, %s141_s9 }
  0x1b   :  { %73 = vrot.lane.b32.xlu2 %v112_v11, %s142_s12 }
  0x22   :  { %79 = vrot.lane.b32.xlu0 %v113_v12, %s143_s17  ;;  %85 = vrot.lane.b32.xlu1 %v114_v13, %s144_s18 }
  0x23   :  { %91 = vrot.lane.b32.xlu2 %v115_v14, %s145_s21 }
  0x5d   :  { %v32_v16 = vpop.permute.xlu2 %31  }
  0x65   :  { %v38_v17 = vpop.permute.xlu2 %37  }
  0x6d   :  { %v56_v18 = vpop.permute.xlu2 %55  }
  0x74   :  { %v8_v19 = vpop.permute.xlu0 %7   ;;  %v20_v20 = vpop.permute.xlu1 %19  }
  0x75   :  { %10 = vst.msk [vmem:[#allocation0] sm:$0x1] %vm9_vm1, %v8_v19   ;;  %v74_v21 = vpop.permute.xlu2 %73  }
  0x7c   :  { %v14_v22 = vpop.permute.xlu0 %13   ;;  %v26_v23 = vpop.permute.xlu1 %25  }
  0x7d   :  { %16 = vst.msk [vmem:[#allocation0] sm:$0x1] %vm15_vm2, %v14_v22   ;;  %v92_v24 = vpop.permute.xlu2 %91  }
  0x7e   :  { %22 = vst.msk [vmem:[#allocation0] sm:$0x1] %vm21_vm3, %v20_v20  }
  0x7f   :  { %28 = vst.msk [vmem:[#allocation0] sm:$0x1] %vm27_vm4, %v26_v23  }
  0x80   :  { %34 = vst.msk [vmem:[#allocation0] sm:$0x1] %vm33_vm5, %v32_v16  }
  0x81   :  { %40 = vst.msk [vmem:[#allocation0] sm:$0x1] %vm39_vm6, %v38_v17  }
  0x84   :  { %v44_v25 = vpop.permute.xlu0 %43   ;;  %v50_v26 = vpop.permute.xlu1 %49  }
  0x85   :  { %46 = vst.msk [vmem:[#allocation0] sm:$0x1] %vm45_vm7, %v44_v25  }
  0x86   :  { %52 = vst.msk [vmem:[#allocation0] sm:$0x1] %vm51_vm8, %v50_v26  }
  0x87   :  { %58 = vst.msk [vmem:[#allocation0] sm:$0x1] %vm57_vm9, %v56_v18  }
  0x8c   :  { %v62_v27 = vpop.permute.xlu0 %61   ;;  %v68_v28 = vpop.permute.xlu1 %67  }
  0x8d   :  { %64 = vst.msk [vmem:[#allocation0] sm:$0x1] %vm63_vm10, %v62_v27  }
  0x8e   :  { %70 = vst.msk [vmem:[#allocation0] sm:$0x1] %vm69_vm11, %v68_v28  }
  0x8f   :  { %76 = vst.msk [vmem:[#allocation0] sm:$0x1] %vm75_vm12, %v74_v21  }
  0x94   :  { %v80_v29 = vpop.permute.xlu0 %79   ;;  %v86_v30 = vpop.permute.xlu1 %85  }
  0x95   :  { %82 = vst.msk [vmem:[#allocation0] sm:$0x1] %vm81_vm13, %v80_v29  }
  0x96   :  { %88 = vst.msk [vmem:[#allocation0] sm:$0x1] %vm87_vm14, %v86_v30  }
  0x97   :  { %94 = vst.msk [vmem:[#allocation0] sm:$0x1] %vm93_vm15, %v92_v24  }
  0x9e   :  { %v97_v31 = vld [vmem:[#allocation0] sm:$0x1] }
  0x9f   :  { %100 = vst [vmem:[%s208_s1] sm:$0x1] %v97_v31 }

// kernel: conv_block_forward.1
= control target key start
LH: loop header
LB: loop body
LE: loop exit
PB: predicated region body
PF: predicated region fallthrough
CT: control target
= control target key end

     0   :  { %v83_v0 = vlaneseq  ;;  %vm913_vm0 = vmmov 0   ;;  %vm49_vm2 = vsmask.f32 256  ;;  %vm67_vm3 = vcmask 1040384   ;;  %s915_s16 = smov 64   ;;  %s1212_s0 = inlined_call_operand.vmem [shape: f32[32,64], index: 0, kind: input, shape index: {}]   ;;  %s1213_s1 = inlined_call_operand.vmem [shape: bf16[192,128], index: 1, kind: input, shape index: {}]   ;;  %s1214_s2 = inlined_call_operand.vmem [shape: f32[1,128], index: 2, kind: input, shape index: {}]   ;;  %s1215_s3 = inlined_call_operand.vmem [shape: f32[1,128], index: 3, kind: input, shape index: {}]   ;;  %s1216_s4 = inlined_call_operand.vmem [shape: bf16[384,128], index: 4, kind: input, shape index: {}]   ;;  %s1217_s5 = inlined_call_operand.vmem [shape: f32[1,128], index: 5, kind: input, shape index: {}]   ;;  %s1218_s6 = inlined_call_operand.vmem [shape: f32[1,128], index: 6, kind: input, shape index: {}]   ;;  %s1219_s7 = inlined_call_operand.vmem [shape: f32[32,128], index: 7, kind: output, shape index: {}]  }
   0x1   :  { %v29_v1 = vld [vmem:[%s1212_s0] sm:$0xff]  ;;  %v30_v2 = vld [vmem:[%s1212_s0 + $0x8] sm:$0xff]  ;;  %v31_v3 = vld [vmem:[%s1212_s0 + $0x10] sm:$0xff]  ;;  %v914_v22 = vmov 0   ;;  %vm70_vm7 = vsmask.f32 7424 }
   0x2   :  { %v35_v4 = vpack.c.bf16 %v29_v1, %v29_v1  ;;  %v36_v5 = vpack.c.bf16 %v30_v2, %v30_v2  ;;  %v32_v6 = vld [vmem:[%s1212_s0 + $0x18] sm:$0xff]  ;;  %v37_v7 = vpack.c.bf16 %v31_v3, %v31_v3  ;;  %v971_v9 = vshrl.u32 %v83_v0, 7  ;;  %v876_v15 = vld [vmem:[%s1213_s1 + $0x30] sm:$0xff]  ;;  %vm145_vm1 = vmpackc.low %vm913_vm0, %vm913_vm0 }
   0x3   :  { %v877_v8 = vld [vmem:[%s1213_s1 + $0x38] sm:$0xff]  ;;  %v38_v10 = vpack.c.bf16 %v32_v6, %v32_v6  ;;  %v880_v18 = vld [vmem:[%s1213_s1 + $0x50] sm:$0xff]  ;;  %v149_v23 = vsel %vm145_vm1, 65537, %v914_v22  ;;  %v875_v26 = vld [vmem:[%s1213_s1 + $0x28] sm:$0xff]  ;;  %v998_v30 = vunpack.c.l.b16 %v914_v22  ;;  %v1010_v37 = vunpack.c.h.b16 %v914_v22 }
   0x4   :  { %v881_v11 = vld [vmem:[%s1213_s1 + $0x58] sm:$0xff]  ;;  %v43_v12 = vunpack.c.l.b16 %v35_v4  ;;  %v44_v13 = vunpack.c.l.b16 %v36_v5  ;;  %v45_v14 = vunpack.c.l.b16 %v37_v7  ;;  %319 = vmatpush.bf16.msra.mxu0 %v877_v8  ;;  %v85_v16 = vadd.s32 8, %v971_v9  ;;  %v879_v29 = vld [vmem:[%s1213_s1 + $0x48] sm:$0xff]  ;;  %vm1005_vm6 = vmand %vm67_vm3, %vm49_vm2 }
   0x5   :  { %v980_v17 = vunpack.c.l.b16 %v38_v10  ;;  %342 = vmatpush.bf16.msra.mxu1 %v881_v11  ;;  %v153_v27 = vunpack.c.l.b16 %v149_v23  ;;  %v874_v39 = vld [vmem:[%s1213_s1 + $0x20] sm:$0xff]  ;;  %v873_v46 = vld [vmem:[%s1213_s1 + $0x18] sm:$0xff]  ;;  %vm208_vm11 = vcmask 523264   ;;  %v872_v49 = vld [vmem:[%s1213_s1 + $0x10] sm:$0xff]  ;;  %v87_v52 = vadd.s32 24, %v971_v9 }
   0x6   :  { %v47_v19 = vpack.c.b16 %v44_v13, %v43_v12  ;;  %v99_v20 = vand.u32 15, %v85_v16  ;;  %v878_v42 = vld [vmem:[%s1213_s1 + $0x40] sm:$0xff]  ;;  %v871_v50 = vld [vmem:[%s1213_s1 + $0x8] sm:$0xff]  ;;  %vm80_vm14 = vcmask 1047552   ;;  %v92_v59 = vand.u32 15, %v971_v9 }
   0x7   :  { %v986_v21 = vpack.c.b16 %v980_v17, %v45_v14  ;;  %v1000_v33 = vunpack.i.l.s16 %v153_v27  ;;  %v870_v51 = vld [vmem:[%s1213_s1] sm:$0xff]  ;;  %v113_v54 = vand.u32 15, %v87_v52  ;;  %v78_v55 = vpack.c.b16 %v980_v17, %v980_v17  ;;  %vm1061_vm15 = vmand %vm80_vm14, %vm70_vm7  ;;  %v897_v14 = vld [vmem:[%s1216_s4 + $0x78] sm:$0xff] }
   0x8   :  { %204 = vrot.lane.b32.xlu0 %v47_v19, %s915_s16  ;;  %v51_v24 = vshrl.u32 %v47_v19, 16  ;;  %v54_v25 = vshll.u32 %v47_v19, 16  ;;  %320 = vmatpush.bf16.msra.mxu0 %v876_v15  ;;  %vm141_vm4 = vcmp.eq.s32.totalorder %v99_v20, 15  ;;  %v86_v62 = vadd.s32 16, %v971_v9  ;;  %v896_v15 = vld [vmem:[%s1216_s4 + $0x70] sm:$0xff]  ;;  %v894_v23 = vld [vmem:[%s1216_s4 + $0x60] sm:$0xff] }
   0x9   :  { %v61_v28 = vshll.u32 %v986_v21, 16  ;;  %343 = vmatpush.bf16.msra.mxu1 %v880_v18  ;;  %vm175_vm5 = vmpackc.low %vm141_vm4, %vm141_vm4  ;;  %vm192_vm8 = vcmp.ne.s32.totalorder %v1000_v33, %v998_v30  ;;  %v58_v53 = vshrl.u32 %v986_v21, 16  ;;  %vm143_vm12 = vcmp.eq.s32.totalorder %v113_v54, 15  ;;  %644 = vmatpush.bf16.msra.mxu3 %v897_v14  ;;  %v905_v27 = vld [vmem:[%s1216_s4 + $0xb8] sm:$0xff]  ;;  %v898_v54 = vld [vmem:[%s1216_s4 + $0x80] sm:$0xff] }
   0xa   :  { %v53_v31 = vrot.slane %v51_v24, 7  ;;  %v71_v32 = vrot.slane %v54_v25, 1  ;;  %v179_v34 = vsel %vm175_vm5, 65537, %v914_v22  ;;  %vm177_vm13 = vmpackc.low %vm143_vm12, %vm143_vm12  ;;  %v106_v2 = vand.u32 15, %v86_v62  ;;  %v912_v60 = vld [vmem:[%s1218_s6] ss:$0 sm:$0xff] }
   0xb   :  { %v73_v36 = vrot.slane %v61_v28, 1  ;;  %v183_v38 = vunpack.c.l.b16 %v179_v34  ;;  %v60_v56 = vrot.slane %v58_v53, 7  ;;  %v181_v58 = vsel %vm177_vm13, 65537, %v914_v22  ;;  %v886_v34 = vld [vmem:[%s1216_s4 + $0x20] sm:$0xff] }
   0xc   :  { %321 = vmatpush.bf16.msra.mxu0 %v875_v26  ;;  %v56_v40 = vor.u32 %v54_v25, %v53_v31  ;;  %v72_v41 = vor.u32 %v71_v32, %v51_v24  ;;  %v185_v61 = vunpack.c.l.b16 %v181_v58  ;;  %vm136_vm0 = vcmp.eq.s32.totalorder %v92_v59, 0  ;;  %v893_v24 = vld [vmem:[%s1216_s4 + $0x58] sm:$0xff]  ;;  %v892_v25 = vld [vmem:[%s1216_s4 + $0x50] sm:$0xff]  ;;  %v887_v32 = vld [vmem:[%s1216_s4 + $0x28] sm:$0xff] }
   0xd   :  { %344 = vmatpush.bf16.msra.mxu1 %v879_v29  ;;  %v721_v43 = vunpack.i.l.s16 %v183_v38  ;;  %v75_v57 = vor.u32 %v73_v36, %v58_v53  ;;  %v63_v63 = vor.u32 %v61_v28, %v60_v56  ;;  %vm138_vm3 = vcmp.eq.s32.totalorder %v106_v2, 0  ;;  %645 = vmatpush.bf16.msra.mxu3 %v896_v15  ;;  %v889_v26 = vld [vmem:[%s1216_s4 + $0x38] sm:$0xff]  ;;  %v891_v28 = vld [vmem:[%s1216_s4 + $0x48] sm:$0xff]  ;;  %v888_v29 = vld [vmem:[%s1216_s4 + $0x30] sm:$0xff] }
   0xe   :  { %v1022_v44 = vsel %vm1005_vm6, %v35_v4, %v56_v40  ;;  %v1025_v45 = vsel %vm70_vm7, %v72_v41, %v73_v36  ;;  %v723_v1 = vunpack.i.l.s16 %v185_v61  ;;  %vm146_vm5 = vmpackc.low %vm138_vm3, %vm138_vm3  ;;  %vm163_vm12 = vcmp.ne.s32.totalorder %v1000_v33, %v1010_v37  ;;  %625 = vmatpush.bf16.msra.mxu2 %v889_v26  ;;  %v903_v33 = vld [vmem:[%s1216_s4 + $0xa8] sm:$0xff]  ;;  %v902_v36 = vld [vmem:[%s1216_s4 + $0xa0] sm:$0xff] }
   0xf   :  { %vm193_vm9 = vcmp.ne.s32.totalorder %v721_v43, %v1010_v37  ;;  %v82_v0 = vsel %vm1061_vm15, %v75_v57, %v78_v55  ;;  %v64_v3 = vsel %vm49_vm2, %v53_v31, %v63_v63  ;;  %v150_v6 = vsel %vm146_vm5, 65537, %v914_v22  ;;  %v890_v31 = vld [vmem:[%s1216_s4 + $0x40] sm:$0xff]  ;;  %v885_v38 = vld [vmem:[%s1216_s4 + $0x18] sm:$0xff]  ;;  %v884_v41 = vld [vmem:[%s1216_s4 + $0x10] sm:$0xff] }
  0x10   :  { %206 = vrot.lane.b32.xlu0 %v986_v21, %s915_s16  ;;  %322 = vmatpush.bf16.msra.mxu0 %v874_v39  ;;  %vm1036_vm10 = vmpackc.low %vm193_vm9, %vm192_vm8  ;;  %vm200_vm1 = vcmp.ne.s32.totalorder %v723_v1, %v1010_v37  ;;  %v154_v7 = vunpack.c.l.b16 %v150_v6  ;;  %v901_v39 = vld [vmem:[%s1216_s4 + $0x98] sm:$0xff]  ;;  %v909_v40 = vld [vmem:[%s1214_s2] ss:$0 sm:$0xff] }
  0x11   :  { %345 = vmatpush.bf16.msra.mxu1 %v878_v42  ;;  %v202_v48 = vsel %vm1036_vm10, %v1022_v44, %v1025_v45  ;;  %vm1073_vm4 = vmpackc.low %vm200_vm1, %vm192_vm8  ;;  %v900_v42 = vld [vmem:[%s1216_s4 + $0x90] sm:$0xff]  ;;  %v882_v53 = vld [vmem:[%s1216_s4] sm:$0xff] }
  0x12   :  { %v203_v5 = vsel %vm1073_vm4, %v64_v3, %v82_v0  ;;  %vm144_vm9 = vmpackc.low %vm136_vm0, %vm136_vm0  ;;  %v718_v9 = vunpack.i.l.s16 %v154_v7  ;;  %626 = vmatpush.bf16.msra.mxu2 %v888_v29 }
  0x13   :  { %v148_v8 = vsel %vm144_vm9, 65537, %v914_v22  ;;  %v895_v22 = vld [vmem:[%s1216_s4 + $0x68] sm:$0xff] }
  0x14   :  { %323 = vmatpush.bf16.msra.mxu0 %v873_v46  ;;  %772 = vmatmul.msk.bf16.vlgmr.msra.gmra.mxu1 %vm208_vm11, %v202_v48  ;;  %vm169_vm8 = vcmp.ne.s32.totalorder %v718_v9, %v998_v30  ;;  %v152_v10 = vunpack.c.l.b16 %v148_v8  ;;  %v883_v48 = vld [vmem:[%s1216_s4 + $0x8] sm:$0xff] }
  0x15   :  { %vm1085_vm13 = vmpackc.low %vm163_vm12, %vm169_vm8  ;;  %646 = vmatpush.bf16.msra.mxu3 %v895_v22  ;;  %663 = vmatpush.bf16.msrb.mxu1 %v905_v27 }
  0x16   :  { %v173_v12 = vsel %vm1085_vm13, %v82_v0, %v64_v3  ;;  %v716_v13 = vunpack.i.l.s16 %v152_v10  ;;  %627 = vmatpush.bf16.msra.mxu2 %v887_v32 }
  0x18   :  { %324 = vmatpush.bf16.msra.mxu0 %v872_v49  ;;  %vm162_vm14 = vcmp.ne.s32.totalorder %v716_v13, %v998_v30  ;;  %v904_v30 = vld [vmem:[%s1216_s4 + $0xb0] sm:$0xff]  ;;  %v899_v49 = vld [vmem:[%s1216_s4 + $0x88] sm:$0xff] }
  0x19   :  { %vm1098_vm0 = vmpackc.low %vm163_vm12, %vm162_vm14  ;;  %647 = vmatpush.bf16.msra.mxu3 %v894_v23  ;;  %664 = vmatpush.bf16.msrb.mxu1 %v904_v30 }
  0x1a   :  { %v172_v17 = vsel %vm1098_vm0, %v1025_v45, %v1022_v44  ;;  %628 = vmatpush.bf16.msra.mxu2 %v886_v34  ;;  %v910_v45 = vld [vmem:[%s1215_s3] ss:$0 sm:$0xff] }
  0x1c   :  { %325 = vmatpush.bf16.msra.mxu0 %v871_v50 }
  0x1d   :  { %648 = vmatpush.bf16.msra.mxu3 %v893_v24  ;;  %665 = vmatpush.bf16.msrb.mxu1 %v903_v33 }
  0x1e   :  { %629 = vmatpush.bf16.msra.mxu2 %v885_v38 }
  0x20   :  { %326 = vmatpush.bf16.msra.mxu0 %v870_v51 }
  0x21   :  { %649 = vmatpush.bf16.msra.mxu3 %v892_v25  ;;  %666 = vmatpush.bf16.msrb.mxu1 %v902_v36 }
  0x22   :  { %630 = vmatpush.bf16.msra.mxu2 %v884_v41 }
  0x24   :  { %773 = vmatmul.msk.bf16.gmra.mxu1 %vm208_vm11, %v203_v5 }
  0x25   :  { %650 = vmatpush.bf16.msra.mxu3 %v891_v28  ;;  %667 = vmatpush.bf16.msrb.mxu1 %v901_v39 }
  0x26   :  { %631 = vmatpush.bf16.msra.mxu2 %v883_v48 }
  0x29   :  { %651 = vmatpush.bf16.msra.mxu3 %v890_v31  ;;  %668 = vmatpush.bf16.msrb.mxu1 %v900_v42 }
  0x2a   :  { %632 = vmatpush.bf16.msra.mxu2 %v882_v53 }
  0x2d   :  { %669 = vmatpush.bf16.msrb.mxu1 %v899_v49 }
  0x31   :  { %670 = vmatpush.bf16.msrb.mxu1 %v898_v54 }
  0x7a   :  { %v205_v18 = vpop.permute.xlu0 %204 }
  0x7b   :  { %v211_v19 = vsel %vm208_vm11, %v172_v17, %v205_v18 }
  0x7c   :  { %327 = vmatmul.bf16.vlgmr.msra.gmra.mxu0 %v211_v19 }
  0x82   :  { %v207_v20 = vpop.permute.xlu0 %206 }
  0x83   :  { %v215_v21 = vsel %vm208_vm11, %v173_v12, %v207_v20 }
  0x8c   :  { %332 = vmatmul.bf16.gmra.mxu0 %v215_v21 }
  0x91   :  { %v347_v37 = vpop.f32.mrf.mxu1 }
  0x99   :  { %v349_v50 = vpop.f32.mrf.mxu1 }
  0xa1   :  { %v352_v61 = vpop.f32.mrf.mxu1 }
  0xa9   :  { %v354_v10 = vpop.f32.mrf.mxu1 }
  0xf9   :  { %v328_v43 = vpop.f32.mrf.mxu0 }
  0xfa   :  { %v348_v44 = vadd.f32 %v347_v37, %v328_v43 }
  0xfc   :  { %v360_v46 = vmul.f32 %v909_v40, %v348_v44 }
  0xfe   :  { %v367_v51 = vadd.f32 %v910_v45, %v360_v46 }
 0x100   :  { %v375_v55 = vmul.f32 0.01, %v367_v51  ;;  %vm371_vm11 = vcmp.ge.f32.partialorder %v367_v51, 0.0 }
 0x101   :  { %v330_v52 = vpop.f32.mrf.mxu0 }
 0x102   :  { %v350_v56 = vadd.f32 %v349_v50, %v330_v52  ;;  %v379_v59 = vsel %vm371_vm11, %v367_v51, %v375_v55  ;;  %v911_v50 = vld [vmem:[%s1217_s5] ss:$0 sm:$0xff] }
 0x103   :  { %v385_v0 = vpack.c.bf16 %v379_v59, %v379_v59 }
 0x104   :  { %v361_v57 = vmul.f32 %v909_v40, %v350_v56 }
 0x105   :  { %v393_v6 = vunpack.c.l.b16 %v385_v0 }
 0x106   :  { %v368_v58 = vadd.f32 %v910_v45, %v361_v57 }
 0x108   :  { %v376_v62 = vmul.f32 0.01, %v368_v58  ;;  %vm372_vm1 = vcmp.ge.f32.partialorder %v368_v58, 0.0 }
 0x109   :  { %v333_v63 = vpop.f32.mrf.mxu0 }
 0x10a   :  { %v353_v1 = vadd.f32 %v352_v61, %v333_v63  ;;  %v380_v2 = vsel %vm372_vm1, %v368_v58, %v376_v62 }
 0x10b   :  { %v386_v3 = vpack.c.bf16 %v380_v2, %v380_v2 }
 0x10c   :  { %v362_v5 = vmul.f32 %v909_v40, %v353_v1 }
 0x10d   :  { %v394_v7 = vunpack.c.l.b16 %v386_v3 }
 0x10e   :  { %v369_v8 = vadd.f32 %v910_v45, %v362_v5 }
 0x10f   :  { %v397_v9 = vpack.c.b16 %v394_v7, %v393_v6 }
 0x110   :  { %v377_v13 = vmul.f32 0.01, %v369_v8  ;;  %vm373_vm3 = vcmp.ge.f32.partialorder %v369_v8, 0.0 }
 0x111   :  { %v335_v12 = vpop.f32.mrf.mxu0  ;;  %652 = vmatmul.bf16.vlgmr.msra.gmra.mxu3 %v397_v9  ;;  %v400_v20 = vshrl.u32 %v397_v9, 16  ;;  %v403_v23 = vshll.u32 %v397_v9, 16 }
 0x112   :  { %v355_v14 = vadd.f32 %v354_v10, %v335_v12  ;;  %v381_v18 = vsel %vm373_vm3, %v369_v8, %v377_v13 }
 0x113   :  { %v387_v21 = vpack.c.bf16 %v381_v18, %v381_v18  ;;  %v402_v27 = vrot.slane %v400_v20, 7  ;;  %v417_v29 = vrot.slane %v403_v23, 1 }
 0x114   :  { %v363_v15 = vmul.f32 %v909_v40, %v355_v14 }
 0x115   :  { %v395_v25 = vunpack.c.l.b16 %v387_v21  ;;  %v405_v31 = vor.u32 %v403_v23, %v402_v27  ;;  %v418_v32 = vor.u32 %v417_v29, %v400_v20 }
 0x116   :  { %v370_v17 = vadd.f32 %v910_v45, %v363_v15 }
 0x117   :  { %v416_v34 = vsel %vm1005_vm6, %v385_v0, %v405_v31 }
 0x118   :  { %v378_v19 = vmul.f32 0.01, %v370_v17  ;;  %vm374_vm5 = vcmp.ge.f32.partialorder %v370_v17, 0.0 }
 0x11a   :  { %v382_v22 = vsel %vm374_vm5, %v370_v17, %v378_v19 }
 0x11b   :  { %v388_v24 = vpack.c.bf16 %v382_v22, %v382_v22 }
 0x11d   :  { %v396_v26 = vunpack.c.l.b16 %v388_v24 }
 0x11f   :  { %v398_v28 = vpack.c.b16 %v396_v26, %v395_v25  ;;  %v424_v43 = vpack.c.b16 %v396_v26, %v396_v26 }
 0x121   :  { %v410_v30 = vshll.u32 %v398_v28, 16  ;;  %657 = vmatmul.bf16.gmra.mxu3 %v398_v28  ;;  %v407_v39 = vshrl.u32 %v398_v28, 16 }
 0x123   :  { %v419_v33 = vrot.slane %v410_v30, 1  ;;  %v409_v40 = vrot.slane %v407_v39, 7 }
 0x125   :  { %v420_v36 = vsel %vm70_vm7, %v418_v32, %v419_v33  ;;  %v412_v41 = vor.u32 %v410_v30, %v409_v40  ;;  %v421_v42 = vor.u32 %v419_v33, %v407_v39 }
 0x126   :  { %v427_v37 = vsel %vm1098_vm0, %v420_v36, %v416_v34  ;;  %v429_v38 = vsel %vm1036_vm10, %v416_v34, %v420_v36 }
 0x127   :  { %633 = vmatmul.bf16.vlgmr.msra.gmra.mxu2 %v427_v37  ;;  %671 = vmatmul.bf16.vlgmr.msrb.gmra.mxu1 %v429_v38  ;;  %v413_v44 = vsel %vm49_vm2, %v402_v27, %v412_v41  ;;  %v426_v35 = vsel %vm1061_vm15, %v421_v42, %v424_v43 }
 0x128   :  { %v428_v45 = vsel %vm1085_vm13, %v426_v35, %v413_v44  ;;  %v430_v16 = vsel %vm1073_vm4, %v413_v44, %v426_v35 }
 0x137   :  { %638 = vmatmul.bf16.gmra.mxu2 %v428_v45  ;;  %676 = vmatmul.bf16.gmra.mxu1 %v430_v16 }
 0x194   :  { %v653_v47 = vpop.f32.mrf.mxu3 }
 0x19c   :  { %v655_v11 = vpop.f32.mrf.mxu3 }
 0x1a4   :  { %v672_v46 = vpop.f32.mrf.mxu1  ;;  %v658_v61 = vpop.f32.mrf.mxu3 }
 0x1aa   :  { %v634_v48 = vpop.f32.mrf.mxu2 }
 0x1ab   :  { %v654_v49 = vadd.f32 %v653_v47, %v634_v48 }
 0x1ac   :  { %v674_v53 = vpop.f32.mrf.mxu1  ;;  %v660_v8 = vpop.f32.mrf.mxu3 }
 0x1ad   :  { %v673_v51 = vadd.f32 %v672_v46, %v654_v49 }
 0x1af   :  { %v685_v52 = vmul.f32 %v911_v50, %v673_v51 }
 0x1b1   :  { %v692_v4 = vadd.f32 %v912_v60, %v685_v52 }
 0x1b2   :  { %v636_v54 = vpop.f32.mrf.mxu2 }
 0x1b3   :  { %vm696_vm2 = vcmp.ge.f32.partialorder %v692_v4, 0.0  ;;  %v700_v55 = vmul.f32 0.01, %v692_v4  ;;  %v656_v56 = vadd.f32 %v655_v11, %v636_v54 }
 0x1b4   :  { %v677_v63 = vpop.f32.mrf.mxu1 }
 0x1b5   :  { %v704_v57 = vsel %vm696_vm2, %v692_v4, %v700_v55  ;;  %v675_v58 = vadd.f32 %v674_v53, %v656_v56 }
 0x1b6   :  { %708 = vst [vmem:[%s1219_s7] sm:$0xff] %v704_v57 }
 0x1b7   :  { %v686_v59 = vmul.f32 %v911_v50, %v675_v58 }
 0x1b9   :  { %v693_v62 = vadd.f32 %v912_v60, %v686_v59 }
 0x1ba   :  { %v639_v0 = vpop.f32.mrf.mxu2 }
 0x1bb   :  { %vm697_vm6 = vcmp.ge.f32.partialorder %v693_v62, 0.0  ;;  %v701_v1 = vmul.f32 0.01, %v693_v62  ;;  %v659_v2 = vadd.f32 %v658_v61, %v639_v0 }
 0x1bc   :  { %v679_v13 = vpop.f32.mrf.mxu1 }
 0x1bd   :  { %v705_v3 = vsel %vm697_vm6, %v693_v62, %v701_v1  ;;  %v678_v5 = vadd.f32 %v677_v63, %v659_v2 }
 0x1be   :  { %709 = vst [vmem:[%s1219_s7 + $0x8] sm:$0xff] %v705_v3 }
 0x1bf   :  { %v687_v6 = vmul.f32 %v911_v50, %v678_v5 }
 0x1c1   :  { %v694_v7 = vadd.f32 %v912_v60, %v687_v6 }
 0x1c2   :  { %v641_v9 = vpop.f32.mrf.mxu2 }
 0x1c3   :  { %vm698_vm7 = vcmp.ge.f32.partialorder %v694_v7, 0.0  ;;  %v702_v10 = vmul.f32 0.01, %v694_v7  ;;  %v661_v12 = vadd.f32 %v660_v8, %v641_v9 }
 0x1c5   :  { %v706_v14 = vsel %vm698_vm7, %v694_v7, %v702_v10  ;;  %v680_v15 = vadd.f32 %v679_v13, %v661_v12 }
 0x1c6   :  { %710 = vst [vmem:[%s1219_s7 + $0x10] sm:$0xff] %v706_v14 }
 0x1c7   :  { %v688_v17 = vmul.f32 %v911_v50, %v680_v15 }
 0x1c9   :  { %v695_v18 = vadd.f32 %v912_v60, %v688_v17 }
 0x1cb   :  { %vm699_vm10 = vcmp.ge.f32.partialorder %v695_v18, 0.0  ;;  %v703_v19 = vmul.f32 0.01, %v695_v18 }
 0x1cd   :  { %v707_v20 = vsel %vm699_vm10, %v695_v18, %v703_v19 }
 0x1ce   :  { %711 = vst [vmem:[%s1219_s7 + $0x18] sm:$0xff] %v707_v20 }

</bundles_post_ra>
